<compile_context>
chip_gen: v7x
topology: tpu7x:2x2x1
jax: 0.10.0
libtpu: 0.0.40
codegen_flags: <defaults>
</compile_context>

<pallas_src>
import functools

import jax
import jax.numpy as jnp
from jax import lax
from jax.experimental import pallas as pl
from jax.experimental.pallas import tpu as pltpu


def _round_up(x, m):
    return (x + m - 1) // m * m


def _paco_kernel(anc_ref, feat_ref, anc_lab_ref, all_lab_ref, sup_ref, out_ref,
                 m_scr, z_scr, num_scr, den_scr, *,
                 tile_b, tile_n, num_classes, n_real, resident, col_padded,
                 alpha, beta, gamma, supt, temperature, base_temperature,
                 smooth):
    i = pl.program_id(0)            # anchor-tile index   ("parallel")
    j = pl.program_id(1)            # contrast-tile index ("arbitrary" reduction)
    C = num_classes
    inv_supt = 1.0 / supt

    anc_lab = anc_lab_ref[...]      # (tile_b, 1) int32

    # ---- j == 0: fold the supervised-logits block into the accumulators ----
    @pl.when(j == 0)
    def _init():
        sup = sup_ref[...].astype(jnp.float32) * inv_supt          # (tile_b, C)
        cls = lax.broadcasted_iota(jnp.int32, (tile_b, C), 1)
        oh = jnp.where(cls == anc_lab, 1.0 - smooth, smooth / (C - 1))
        m0 = jnp.max(sup, axis=1, keepdims=True)
        m_scr[...] = m0
        z_scr[...] = jnp.sum(jnp.exp(sup - m0), axis=1, keepdims=True)
        num_scr[...] = beta * jnp.sum(oh * sup, axis=1, keepdims=True)
        # sum of the smoothed one-hot is exactly 1 -> denominator starts at beta
        den_scr[...] = jnp.full((tile_b, 1), beta, jnp.float32)

    # ---- contrast tile: bf16 MXU matmul (RHS transposed natively) ----
    if resident:
        jj = pl.multiple_of(j * tile_n, tile_n)
        f = feat_ref[pl.ds(jj, tile_n), :]                         # (tile_n, D)
    else:
        f = feat_ref[...]                                          # (tile_n, D)
    # anchors were pre-scaled by 1/temperature in the wrapper.
    dots = lax.dot_general(anc_ref[...], f, (((1,), (1,)), ((), ())),
                           preferred_element_type=jnp.float32)     # (tile_b, tile_n)

    # ---- online log-sum-exp bookkeeping ----
    m_old = m_scr[...]
    m_new = jnp.maximum(m_old, jnp.max(dots, axis=1, keepdims=True))
    corr = jnp.exp(m_old - m_new)
    p = jnp.exp(dots - m_new)
    m_scr[...] = m_new

    eq = anc_lab == all_lab_ref[...]                               # (tile_b, tile_n)

    if col_padded:   # static: only emitted when N was padded up to N_pad
        col_g = lax.broadcasted_iota(jnp.int32, (tile_b, tile_n), 1) + j * tile_n
        cvalid = col_g < n_real
    else:
        col_g = None
        cvalid = None

    # Does this tile intersect the self-contrast diagonal?
    diag = jnp.logical_and(i * tile_b < (j + 1) * tile_n,
                           j * tile_n < (i + 1) * tile_b)

    @pl.when(diag)
    def _with_diag():
        row_g = lax.broadcasted_iota(jnp.int32, (tile_b, tile_n), 0) + i * tile_b
        cg = col_g if col_g is not None else (
            lax.broadcasted_iota(jnp.int32, (tile_b, tile_n), 1) + j * tile_n)
        not_self = row_g != cg
        zmask = not_self if cvalid is None else jnp.logical_and(not_self, cvalid)
        pos = jnp.logical_and(eq, not_self)
        z_scr[...] = corr * z_scr[...] + gamma * jnp.sum(
            jnp.where(zmask, p, 0.0), axis=1, keepdims=True)
        num_scr[...] = num_scr[...] + alpha * jnp.sum(
            jnp.where(pos, dots, 0.0), axis=1, keepdims=True)
        den_scr[...] = den_scr[...] + alpha * jnp.sum(
            jnp.where(pos, 1.0, 0.0), axis=1, keepdims=True)

    @pl.when(jnp.logical_not(diag))
    def _off_diag():
        if cvalid is None:
            z_add = jnp.sum(p, axis=1, keepdims=True)
        else:
            z_add = jnp.sum(jnp.where(cvalid, p, 0.0), axis=1, keepdims=True)
        z_scr[...] = corr * z_scr[...] + gamma * z_add
        num_scr[...] = num_scr[...] + alpha * jnp.sum(
            jnp.where(eq, dots, 0.0), axis=1, keepdims=True)
        den_scr[...] = den_scr[...] + alpha * jnp.sum(
            jnp.where(eq, 1.0, 0.0), axis=1, keepdims=True)

    # ---- last j: finalize per-anchor loss ----
    @pl.when(j == pl.num_programs(1) - 1)
    def _fin():
        mlpp = (num_scr[...] / den_scr[...]
                - m_scr[...] - jnp.log(z_scr[...] + 1e-12))
        out_ref[...] = (-(temperature / base_temperature)) * mlpp


def paco_loss(features, labels, sup_logits, *, K, num_classes,
              alpha=0.05, beta=1.0, gamma=1.0, supt=1.0,
              temperature=0.2, base_temperature=None, smooth=0.1,
              tile_b=256, tile_n=512, resident_max_bytes=16 * 2**20):
    if base_temperature is None:
        base_temperature = temperature
    N, D = features.shape
    B = N - K
    C = num_classes
    assert B > 0

    # ---- tile sizing: respect (8,128) layout, pad to tile multiples, keep
    #      >=2 anchor tiles so the "parallel" axis can feed two TensorCores ----
    tile_n = min(tile_n, _round_up(N, 128))            # multiple of 128
    tile_b = min(tile_b, _round_up(B, 8))               # multiple of 8
    if _round_up(B, tile_b) // tile_b < 2 and tile_b > 8:
        tile_b = _round_up(max(tile_b // 2, 8), 8)
    B_pad = _round_up(B, tile_b)
    N_pad = _round_up(N, tile_n)
    nb, nn = B_pad // tile_b, N_pad // tile_n
    col_padded = N_pad != N

    # ---- operand prep: fold 1/T into the anchors, bf16 for the MXU ----
    inv_t = 1.0 / temperature
    feats32 = features.astype(jnp.float32)
    anchors = (feats32[:B] * inv_t).astype(jnp.bfloat16)      # (B, D)
    feats = feats32.astype(jnp.bfloat16)                      # (N, D)
    labels = labels.reshape(-1).astype(jnp.int32)
    sup = sup_logits.astype(jnp.float32)

    if B_pad != B:
        anchors = jnp.pad(anchors, ((0, B_pad - B), (0, 0)))
        sup = jnp.pad(sup, ((0, B_pad - B), (0, 0)))
    if N_pad != N:
        feats = jnp.pad(feats, ((0, N_pad - N), (0, 0)))
    anc_lab = jnp.pad(labels[:B], (0, B_pad - B),
                      constant_values=-1).reshape(B_pad, 1)
    all_lab = jnp.pad(labels, (0, N_pad - N),
                      constant_values=-1).reshape(1, N_pad)

    # ---- resident vs streamed contrast features ----
    feat_bytes = N_pad * D * 2
    resident = feat_bytes <= resident_max_bytes
    if resident:
        feats_spec = pl.BlockSpec((N_pad, D), lambda i, j: (0, 0))   # one DMA
    else:
        feats_spec = pl.BlockSpec((tile_n, D), lambda i, j: (j, 0))  # streamed

    kernel = functools.partial(
        _paco_kernel,
        tile_b=tile_b, tile_n=tile_n, num_classes=C, n_real=N,
        resident=resident, col_padded=col_padded,
        alpha=alpha, beta=beta, gamma=gamma, supt=supt,
        temperature=temperature, base_temperature=base_temperature,
        smooth=smooth)

    # ---- VMEM budget (inputs are double-buffered) + cost estimate ----
    feat_buf = 2 * feat_bytes if resident else 2 * tile_n * D * 2
    need = (2 * tile_b * D * 2 + feat_buf
            + 2 * tile_b * 4 + 2 * tile_n * 4
            + 2 * tile_b * C * 4
            + 2 * tile_b * 4 + 4 * tile_b * 4)
    vmem_limit = int(min(100 * 2**20, max(32 * 2**20, need + 8 * 2**20)))

    feat_reads = feat_bytes if resident else nb * feat_bytes
    cost = pl.CostEstimate(
        flops=int(2 * B_pad * N_pad * D + 2 * B_pad * C),
        transcendentals=int(B_pad * (N_pad + C)),
        bytes_accessed=int(B_pad * D * 2 + feat_reads + B_pad * C * 4
                           + 4 * (B_pad + N_pad) + 4 * B_pad))

    per_anchor = pl.pallas_call(
        kernel,
        out_shape=jax.ShapeDtypeStruct((B_pad, 1), jnp.float32),
        grid_spec=pltpu.PrefetchScalarGridSpec(
            num_scalar_prefetch=0,
            grid=(nb, nn),
            in_specs=[
                pl.BlockSpec((tile_b, D), lambda i, j: (i, 0)),           # anchors/T
                feats_spec,                                               # contrast
                pl.BlockSpec((tile_b, 1), lambda i, j: (i, 0)),           # anchor labels
                pl.BlockSpec((1, tile_n), lambda i, j: (0, j)),           # all labels
                pl.BlockSpec((tile_b, C), lambda i, j: (i, 0)),           # sup logits
            ],
            out_specs=pl.BlockSpec((tile_b, 1), lambda i, j: (i, 0)),
            scratch_shapes=[pltpu.VMEM((tile_b, 1), jnp.float32)] * 4),
        compiler_params=pltpu.CompilerParams(
            dimension_semantics=("parallel", "arbitrary"),
            vmem_limit_bytes=vmem_limit),
        cost_estimate=cost,
    )(anchors, feats, anc_lab, all_lab, sup)

    return jnp.mean(per_anchor[:B, 0])


def paco_loss_ref(features, labels, sup_logits, *, K, num_classes,
                  alpha=0.05, beta=1.0, gamma=1.0, supt=1.0,
                  temperature=0.2, base_temperature=None, smooth=0.1):
    # Pure-JAX reference mirroring the PyTorch forward, for verification.
    if base_temperature is None:
        base_temperature = temperature
    N = features.shape[0]
    B = N - K
    labels = labels.reshape(-1, 1)
    mask = (labels[:B] == labels.T).astype(jnp.float32)
    adc = features[:B] @ features.T / temperature
    adc = jnp.concatenate([sup_logits / supt, adc], axis=1)
    logits = adc - jnp.max(adc, axis=1, keepdims=True)
    lm = jnp.ones((B, N), jnp.float32).at[jnp.arange(B), jnp.arange(B)].set(0.0)
    mask = mask * lm
    oh = jax.nn.one_hot(labels[:B, 0], num_classes, dtype=jnp.float32)
    oh = smooth / (num_classes - 1) * (1 - oh) + (1 - smooth) * oh
    mask = jnp.concatenate([oh * beta, mask * alpha], axis=1)
    lm_full = jnp.concatenate([jnp.ones((B, num_classes)), gamma * lm], axis=1)
    exp_logits = jnp.exp(logits) * lm_full
    log_prob = logits - jnp.log(exp_logits.sum(1, keepdims=True) + 1e-12)
    mlpp = (mask * log_prob).sum(1) / mask.sum(1)
    return (-(temperature / base_temperature) * mlpp).mean()


if __name__ == "__main__":
    # Small, deliberately non-aligned shapes: B=30 anchors, K=210 queue ->
    # N=240 contrast rows (pads to 256), D=128, num_classes=1000 (PyTorch
    # default).  Labels drawn from 10 classes so contrastive positives exist.
    B, K, D, C = 30, 210, 128, 1000
    N = B + K

    key = jax.random.PRNGKey(0)
    kf, kl, ks = jax.random.split(key, 3)
    features = jax.random.normal(kf, (N, D), dtype=jnp.float32)
    features = features / jnp.linalg.norm(features, axis=1, keepdims=True)
    features = features.astype(jnp.bfloat16)          # model features are bf16
    labels = jax.random.randint(kl, (N,), 0, 10, dtype=jnp.int32)
    sup_logits = jax.random.normal(ks, (B, C), dtype=jnp.float32)

    ref = paco_loss_ref(features.astype(jnp.float32), labels, sup_logits,
                        K=K, num_classes=C)

    # 1) small tiles -> 2x2 grid, VMEM-resident contrast set, row+col padding.
    l1 = paco_loss(features, labels, sup_logits, K=K, num_classes=C,
                   tile_b=16, tile_n=128)
    # 2) same tiling, but force the streamed (pipelined) contrast path.
    l2 = paco_loss(features, labels, sup_logits, K=K, num_classes=C,
                   tile_b=16, tile_n=128, resident_max_bytes=0)
    # 3) default (large) tiles, exercising clamping + tile_b auto-halving.
    l3 = paco_loss(features, labels, sup_logits, K=K, num_classes=C)

    l1, l2, l3 = jax.block_until_ready((l1, l2, l3))
    for l in (l1, l2, l3):
        assert jnp.allclose(l, ref, rtol=3e-3, atol=3e-3), (l, ref)

    print("KERNEL_OK")
</pallas_src>

<mosaic_0001>
module attributes {stable_mosaic.version = 11 : i64} {
  func.func @_paco_kernel(%arg0: i32, %arg1: i32, %arg2: memref<16x128xbf16, #tpu.memory_space<vmem>>, %arg3: memref<256x128xbf16, #tpu.memory_space<vmem>>, %arg4: memref<16x1xi32, #tpu.memory_space<vmem>>, %arg5: memref<1x128xi32, #tpu.memory_space<vmem>>, %arg6: memref<16x1000xf32, #tpu.memory_space<vmem>>, %arg7: memref<16x1xf32, #tpu.memory_space<vmem>>, %arg8: memref<16x1xf32, #tpu.memory_space<vmem>>, %arg9: memref<16x1xf32, #tpu.memory_space<vmem>>, %arg10: memref<16x1xf32, #tpu.memory_space<vmem>>, %arg11: memref<16x1xf32, #tpu.memory_space<vmem>>) attributes {dimension_semantics = [#tpu.dimension_semantics<parallel>, #tpu.dimension_semantics<arbitrary>], iteration_bounds = array<i64: 2, 2>, scalar_prefetch = 0 : i64, scratch_operands = 4 : i64, tpu.core_type = #tpu.core_type<tc>, window_params = [{transform_indices = @transform_0, window_bounds = array<i64: 16, 128>}, {pipeline_mode = #tpu.pipeline_mode<synchronous>, transform_indices = @transform_1, window_bounds = array<i64: 256, 128>}, {transform_indices = @transform_2, window_bounds = array<i64: 16, 1>}, {transform_indices = @transform_3, window_bounds = array<i64: 1, 128>}, {transform_indices = @transform_4, window_bounds = array<i64: 16, 1000>}, {transform_indices = @transform_5, window_bounds = array<i64: 16, 1>}]} {
    %c0 = arith.constant 0 : index
    %c0_0 = arith.constant 0 : index
    %0 = vector.load %arg4[%c0, %c0_0] : memref<16x1xi32, #tpu.memory_space<vmem>>, vector<16x1xi32>
    %c0_i32 = arith.constant 0 : i32
    %1 = arith.cmpi eq, %arg1, %c0_i32 : i32
    %2 = arith.extui %1 : i1 to i32
    %c0_i32_1 = arith.constant 0 : i32
    %3 = arith.cmpi ne, %2, %c0_i32_1 : i32
    scf.if %3 {
      %c0_21 = arith.constant 0 : index
      %c0_22 = arith.constant 0 : index
      %47 = vector.load %arg6[%c0_21, %c0_22] : memref<16x1000xf32, #tpu.memory_space<vmem>>, vector<16x1000xf32>
      %cst_23 = arith.constant 1.000000e+00 : f32
      %48 = vector.broadcast %cst_23 : f32 to vector<16x1000xf32>
      %49 = arith.mulf %47, %48 : vector<16x1000xf32>
      %50 = tpu.iota {dimensions = array<i32: 1>} : vector<16x1000xi32>
      %51 = vector.broadcast %0 : vector<16x1xi32> to vector<16x1000xi32>
      %52 = arith.cmpi eq, %50, %51 : vector<16x1000xi32>
      %cst_24 = arith.constant 0.899999976 : f32
      %cst_25 = arith.constant 1.001001E-4 : f32
      %53 = vector.broadcast %cst_24 : f32 to vector<16x1000xf32>
      %54 = vector.broadcast %cst_25 : f32 to vector<16x1000xf32>
      %55 = arith.select %52, %53, %54 : vector<16x1000xi1>, vector<16x1000xf32>
      %cst_26 = arith.constant dense<0xFF800000> : vector<16xf32>
      %56 = vector.multi_reduction <maximumf>, %49, %cst_26 [1] : vector<16x1000xf32> to vector<16xf32>
      %57 = vector.shape_cast %56 : vector<16xf32> to vector<16x1xf32>
      %c0_27 = arith.constant 0 : index
      %c0_28 = arith.constant 0 : index
      %58 = vector.load %arg8[%c0_27, %c0_28] : memref<16x1xf32, #tpu.memory_space<vmem>>, vector<16x1xf32>
      tpu.vector_store %arg8[%c0_27, %c0_28], %57 {strides = array<i32>} : memref<16x1xf32, #tpu.memory_space<vmem>>, vector<16x1xf32>,
      %59 = vector.broadcast %57 : vector<16x1xf32> to vector<16x1000xf32>
      %60 = arith.subf %49, %59 : vector<16x1000xf32>
      %61 = math.exp %60 : vector<16x1000xf32>
      %cst_29 = arith.constant dense<0.000000e+00> : vector<16xf32>
      %62 = vector.multi_reduction <add>, %61, %cst_29 [1] : vector<16x1000xf32> to vector<16xf32>
      %63 = vector.shape_cast %62 : vector<16xf32> to vector<16x1xf32>
      %c0_30 = arith.constant 0 : index
      %c0_31 = arith.constant 0 : index
      %64 = vector.load %arg9[%c0_30, %c0_31] : memref<16x1xf32, #tpu.memory_space<vmem>>, vector<16x1xf32>
      tpu.vector_store %arg9[%c0_30, %c0_31], %63 {strides = array<i32>} : memref<16x1xf32, #tpu.memory_space<vmem>>, vector<16x1xf32>,
      %65 = arith.mulf %55, %49 : vector<16x1000xf32>
      %cst_32 = arith.constant dense<0.000000e+00> : vector<16xf32>
      %66 = vector.multi_reduction <add>, %65, %cst_32 [1] : vector<16x1000xf32> to vector<16xf32>
      %67 = vector.shape_cast %66 : vector<16xf32> to vector<16x1xf32>
      %cst_33 = arith.constant 1.000000e+00 : f32
      %68 = vector.broadcast %cst_33 : f32 to vector<16x1xf32>
      %69 = arith.mulf %68, %67 : vector<16x1xf32>
      %c0_34 = arith.constant 0 : index
      %c0_35 = arith.constant 0 : index
      %70 = vector.load %arg10[%c0_34, %c0_35] : memref<16x1xf32, #tpu.memory_space<vmem>>, vector<16x1xf32>
      tpu.vector_store %arg10[%c0_34, %c0_35], %69 {strides = array<i32>} : memref<16x1xf32, #tpu.memory_space<vmem>>, vector<16x1xf32>,
      %cst_36 = arith.constant 1.000000e+00 : f32
      %71 = vector.broadcast %cst_36 : f32 to vector<16x1xf32>
      %c0_37 = arith.constant 0 : index
      %c0_38 = arith.constant 0 : index
      %72 = vector.load %arg11[%c0_37, %c0_38] : memref<16x1xf32, #tpu.memory_space<vmem>>, vector<16x1xf32>
      tpu.vector_store %arg11[%c0_37, %c0_38], %71 {strides = array<i32>} : memref<16x1xf32, #tpu.memory_space<vmem>>, vector<16x1xf32>,
    } else {
    }
    %c128_i32 = arith.constant 128 : i32
    %4 = arith.muli %arg1, %c128_i32 : i32
    %5 = tpu.assume_multiple %4, 128 : i32
    %6 = arith.index_cast %5 : i32 to index
    %c0_2 = arith.constant 0 : index
    %7 = vector.load %arg3[%6, %c0_2] : memref<256x128xbf16, #tpu.memory_space<vmem>>, vector<128x128xbf16>
    %c0_3 = arith.constant 0 : index
    %c0_4 = arith.constant 0 : index
    %8 = vector.load %arg2[%c0_3, %c0_4] : memref<16x128xbf16, #tpu.memory_space<vmem>>, vector<16x128xbf16>
    %cst = arith.constant dense<0.000000e+00> : vector<16x128xf32>
    %9 = tpu.matmul %8, %7, %cst {dimension_numbers = #tpu.dot_dimension_numbers<[1], [1], [0], [0], [0, 0, 1, 0], [], []>} : vector<16x128xbf16>, vector<128x128xbf16>, vector<16x128xf32> -> vector<16x128xf32>
    %c0_5 = arith.constant 0 : index
    %c0_6 = arith.constant 0 : index
    %10 = vector.load %arg8[%c0_5, %c0_6] : memref<16x1xf32, #tpu.memory_space<vmem>>, vector<16x1xf32>
    %cst_7 = arith.constant dense<0xFF800000> : vector<16xf32>
    %11 = vector.multi_reduction <maximumf>, %9, %cst_7 [1] : vector<16x128xf32> to vector<16xf32>
    %12 = vector.shape_cast %11 : vector<16xf32> to vector<16x1xf32>
    %13 = arith.maximumf %10, %12 : vector<16x1xf32>
    %14 = arith.subf %10, %13 : vector<16x1xf32>
    %15 = math.exp %14 : vector<16x1xf32>
    %16 = vector.broadcast %13 : vector<16x1xf32> to vector<16x128xf32>
    %17 = arith.subf %9, %16 : vector<16x128xf32>
    %18 = math.exp %17 : vector<16x128xf32>
    %c0_8 = arith.constant 0 : index
    %c0_9 = arith.constant 0 : index
    %19 = vector.load %arg8[%c0_8, %c0_9] : memref<16x1xf32, #tpu.memory_space<vmem>>, vector<16x1xf32>
    tpu.vector_store %arg8[%c0_8, %c0_9], %13 {strides = array<i32>} : memref<16x1xf32, #tpu.memory_space<vmem>>, vector<16x1xf32>,
    %c0_10 = arith.constant 0 : index
    %c0_11 = arith.constant 0 : index
    %20 = vector.load %arg5[%c0_10, %c0_11] : memref<1x128xi32, #tpu.memory_space<vmem>>, vector<1x128xi32>
    %21 = vector.broadcast %0 : vector<16x1xi32> to vector<16x128xi32>
    %22 = vector.broadcast %20 : vector<1x128xi32> to vector<16x128xi32>
    %23 = arith.cmpi eq, %21, %22 : vector<16x128xi32>
    %24 = tpu.iota {dimensions = array<i32: 1>} : vector<16x128xi32>
    %c128_i32_12 = arith.constant 128 : i32
    %25 = arith.muli %arg1, %c128_i32_12 : i32
    %26 = vector.broadcast %25 : i32 to vector<16x128xi32>
    %27 = arith.addi %24, %26 : vector<16x128xi32>
    %c240_i32 = arith.constant 240 : i32
    %28 = vector.broadcast %c240_i32 : i32 to vector<16x128xi32>
    %29 = arith.cmpi slt, %27, %28 : vector<16x128xi32>
    %c16_i32 = arith.constant 16 : i32
    %30 = arith.muli %arg0, %c16_i32 : i32
    %c1_i32 = arith.constant 1 : i32
    %31 = arith.addi %arg1, %c1_i32 : i32
    %c128_i32_13 = arith.constant 128 : i32
    %32 = arith.muli %31, %c128_i32_13 : i32
    %33 = arith.cmpi slt, %30, %32 : i32
    %c128_i32_14 = arith.constant 128 : i32
    %34 = arith.muli %arg1, %c128_i32_14 : i32
    %c1_i32_15 = arith.constant 1 : i32
    %35 = arith.addi %arg0, %c1_i32_15 : i32
    %c16_i32_16 = arith.constant 16 : i32
    %36 = arith.muli %35, %c16_i32_16 : i32
    %37 = arith.cmpi slt, %34, %36 : i32
    %38 = arith.andi %33, %37 : i1
    %39 = arith.extui %38 : i1 to i32
    %c0_i32_17 = arith.constant 0 : i32
    %40 = arith.cmpi ne, %39, %c0_i32_17 : i32
    scf.if %40 {
      %47 = tpu.iota {dimensions = array<i32: 0>} : vector<16x128xi32>
      %c16_i32_21 = arith.constant 16 : i32
      %48 = arith.muli %arg0, %c16_i32_21 : i32
      %49 = vector.broadcast %48 : i32 to vector<16x128xi32>
      %50 = arith.addi %47, %49 : vector<16x128xi32>
      %51 = arith.cmpi ne, %50, %27 : vector<16x128xi32>
      %52 = arith.andi %51, %29 : vector<16x128xi1>
      %53 = arith.andi %23, %51 : vector<16x128xi1>
      %c0_22 = arith.constant 0 : index
      %c0_23 = arith.constant 0 : index
      %54 = vector.load %arg9[%c0_22, %c0_23] : memref<16x1xf32, #tpu.memory_space<vmem>>, vector<16x1xf32>
      %55 = arith.mulf %15, %54 : vector<16x1xf32>
      %cst_24 = arith.constant 0.000000e+00 : f32
      %56 = vector.broadcast %cst_24 : f32 to vector<16x128xf32>
      %57 = arith.select %52, %18, %56 : vector<16x128xi1>, vector<16x128xf32>
      %cst_25 = arith.constant dense<0.000000e+00> : vector<16xf32>
      %58 = vector.multi_reduction <add>, %57, %cst_25 [1] : vector<16x128xf32> to vector<16xf32>
      %59 = vector.shape_cast %58 : vector<16xf32> to vector<16x1xf32>
      %cst_26 = arith.constant 1.000000e+00 : f32
      %60 = vector.broadcast %cst_26 : f32 to vector<16x1xf32>
      %61 = arith.mulf %60, %59 : vector<16x1xf32>
      %62 = arith.addf %55, %61 : vector<16x1xf32>
      %c0_27 = arith.constant 0 : index
      %c0_28 = arith.constant 0 : index
      %63 = vector.load %arg9[%c0_27, %c0_28] : memref<16x1xf32, #tpu.memory_space<vmem>>, vector<16x1xf32>
      tpu.vector_store %arg9[%c0_27, %c0_28], %62 {strides = array<i32>} : memref<16x1xf32, #tpu.memory_space<vmem>>, vector<16x1xf32>,
      %c0_29 = arith.constant 0 : index
      %c0_30 = arith.constant 0 : index
      %64 = vector.load %arg10[%c0_29, %c0_30] : memref<16x1xf32, #tpu.memory_space<vmem>>, vector<16x1xf32>
      %cst_31 = arith.constant 0.000000e+00 : f32
      %65 = vector.broadcast %cst_31 : f32 to vector<16x128xf32>
      %66 = arith.select %53, %9, %65 : vector<16x128xi1>, vector<16x128xf32>
      %cst_32 = arith.constant dense<0.000000e+00> : vector<16xf32>
      %67 = vector.multi_reduction <add>, %66, %cst_32 [1] : vector<16x128xf32> to vector<16xf32>
      %68 = vector.shape_cast %67 : vector<16xf32> to vector<16x1xf32>
      %cst_33 = arith.constant 5.000000e-02 : f32
      %69 = vector.broadcast %cst_33 : f32 to vector<16x1xf32>
      %70 = arith.mulf %69, %68 : vector<16x1xf32>
      %71 = arith.addf %64, %70 : vector<16x1xf32>
      %c0_34 = arith.constant 0 : index
      %c0_35 = arith.constant 0 : index
      %72 = vector.load %arg10[%c0_34, %c0_35] : memref<16x1xf32, #tpu.memory_space<vmem>>, vector<16x1xf32>
      tpu.vector_store %arg10[%c0_34, %c0_35], %71 {strides = array<i32>} : memref<16x1xf32, #tpu.memory_space<vmem>>, vector<16x1xf32>,
      %c0_36 = arith.constant 0 : index
      %c0_37 = arith.constant 0 : index
      %73 = vector.load %arg11[%c0_36, %c0_37] : memref<16x1xf32, #tpu.memory_space<vmem>>, vector<16x1xf32>
      %cst_38 = arith.constant 1.000000e+00 : f32
      %cst_39 = arith.constant 0.000000e+00 : f32
      %74 = vector.broadcast %cst_38 : f32 to vector<16x128xf32>
      %75 = vector.broadcast %cst_39 : f32 to vector<16x128xf32>
      %76 = arith.select %53, %74, %75 : vector<16x128xi1>, vector<16x128xf32>
      %cst_40 = arith.constant dense<0.000000e+00> : vector<16xf32>
      %77 = vector.multi_reduction <add>, %76, %cst_40 [1] : vector<16x128xf32> to vector<16xf32>
      %78 = vector.shape_cast %77 : vector<16xf32> to vector<16x1xf32>
      %cst_41 = arith.constant 5.000000e-02 : f32
      %79 = vector.broadcast %cst_41 : f32 to vector<16x1xf32>
      %80 = arith.mulf %79, %78 : vector<16x1xf32>
      %81 = arith.addf %73, %80 : vector<16x1xf32>
      %c0_42 = arith.constant 0 : index
      %c0_43 = arith.constant 0 : index
      %82 = vector.load %arg11[%c0_42, %c0_43] : memref<16x1xf32, #tpu.memory_space<vmem>>, vector<16x1xf32>
      tpu.vector_store %arg11[%c0_42, %c0_43], %81 {strides = array<i32>} : memref<16x1xf32, #tpu.memory_space<vmem>>, vector<16x1xf32>,
    } else {
    }
    %true = arith.constant true
    %41 = arith.xori %38, %true : i1
    %42 = arith.extui %41 : i1 to i32
    %c0_i32_18 = arith.constant 0 : i32
    %43 = arith.cmpi ne, %42, %c0_i32_18 : i32
    scf.if %43 {
      %cst_21 = arith.constant 0.000000e+00 : f32
      %47 = vector.broadcast %cst_21 : f32 to vector<16x128xf32>
      %48 = arith.select %29, %18, %47 : vector<16x128xi1>, vector<16x128xf32>
      %cst_22 = arith.constant dense<0.000000e+00> : vector<16xf32>
      %49 = vector.multi_reduction <add>, %48, %cst_22 [1] : vector<16x128xf32> to vector<16xf32>
      %50 = vector.shape_cast %49 : vector<16xf32> to vector<16x1xf32>
      %c0_23 = arith.constant 0 : index
      %c0_24 = arith.constant 0 : index
      %51 = vector.load %arg9[%c0_23, %c0_24] : memref<16x1xf32, #tpu.memory_space<vmem>>, vector<16x1xf32>
      %52 = arith.mulf %15, %51 : vector<16x1xf32>
      %cst_25 = arith.constant 1.000000e+00 : f32
      %53 = vector.broadcast %cst_25 : f32 to vector<16x1xf32>
      %54 = arith.mulf %53, %50 : vector<16x1xf32>
      %55 = arith.addf %52, %54 : vector<16x1xf32>
      %c0_26 = arith.constant 0 : index
      %c0_27 = arith.constant 0 : index
      %56 = vector.load %arg9[%c0_26, %c0_27] : memref<16x1xf32, #tpu.memory_space<vmem>>, vector<16x1xf32>
      tpu.vector_store %arg9[%c0_26, %c0_27], %55 {strides = array<i32>} : memref<16x1xf32, #tpu.memory_space<vmem>>, vector<16x1xf32>,
      %c0_28 = arith.constant 0 : index
      %c0_29 = arith.constant 0 : index
      %57 = vector.load %arg10[%c0_28, %c0_29] : memref<16x1xf32, #tpu.memory_space<vmem>>, vector<16x1xf32>
      %cst_30 = arith.constant 0.000000e+00 : f32
      %58 = vector.broadcast %cst_30 : f32 to vector<16x128xf32>
      %59 = arith.select %23, %9, %58 : vector<16x128xi1>, vector<16x128xf32>
      %cst_31 = arith.constant dense<0.000000e+00> : vector<16xf32>
      %60 = vector.multi_reduction <add>, %59, %cst_31 [1] : vector<16x128xf32> to vector<16xf32>
      %61 = vector.shape_cast %60 : vector<16xf32> to vector<16x1xf32>
      %cst_32 = arith.constant 5.000000e-02 : f32
      %62 = vector.broadcast %cst_32 : f32 to vector<16x1xf32>
      %63 = arith.mulf %62, %61 : vector<16x1xf32>
      %64 = arith.addf %57, %63 : vector<16x1xf32>
      %c0_33 = arith.constant 0 : index
      %c0_34 = arith.constant 0 : index
      %65 = vector.load %arg10[%c0_33, %c0_34] : memref<16x1xf32, #tpu.memory_space<vmem>>, vector<16x1xf32>
      tpu.vector_store %arg10[%c0_33, %c0_34], %64 {strides = array<i32>} : memref<16x1xf32, #tpu.memory_space<vmem>>, vector<16x1xf32>,
      %c0_35 = arith.constant 0 : index
      %c0_36 = arith.constant 0 : index
      %66 = vector.load %arg11[%c0_35, %c0_36] : memref<16x1xf32, #tpu.memory_space<vmem>>, vector<16x1xf32>
      %cst_37 = arith.constant 1.000000e+00 : f32
      %cst_38 = arith.constant 0.000000e+00 : f32
      %67 = vector.broadcast %cst_37 : f32 to vector<16x128xf32>
      %68 = vector.broadcast %cst_38 : f32 to vector<16x128xf32>
      %69 = arith.select %23, %67, %68 : vector<16x128xi1>, vector<16x128xf32>
      %cst_39 = arith.constant dense<0.000000e+00> : vector<16xf32>
      %70 = vector.multi_reduction <add>, %69, %cst_39 [1] : vector<16x128xf32> to vector<16xf32>
      %71 = vector.shape_cast %70 : vector<16xf32> to vector<16x1xf32>
      %cst_40 = arith.constant 5.000000e-02 : f32
      %72 = vector.broadcast %cst_40 : f32 to vector<16x1xf32>
      %73 = arith.mulf %72, %71 : vector<16x1xf32>
      %74 = arith.addf %66, %73 : vector<16x1xf32>
      %c0_41 = arith.constant 0 : index
      %c0_42 = arith.constant 0 : index
      %75 = vector.load %arg11[%c0_41, %c0_42] : memref<16x1xf32, #tpu.memory_space<vmem>>, vector<16x1xf32>
      tpu.vector_store %arg11[%c0_41, %c0_42], %74 {strides = array<i32>} : memref<16x1xf32, #tpu.memory_space<vmem>>, vector<16x1xf32>,
    } else {
    }
    %c1_i32_19 = arith.constant 1 : i32
    %44 = arith.cmpi eq, %arg1, %c1_i32_19 : i32
    %45 = arith.extui %44 : i1 to i32
    %c0_i32_20 = arith.constant 0 : i32
    %46 = arith.cmpi ne, %45, %c0_i32_20 : i32
    scf.if %46 {
      %c0_21 = arith.constant 0 : index
      %c0_22 = arith.constant 0 : index
      %47 = vector.load %arg10[%c0_21, %c0_22] : memref<16x1xf32, #tpu.memory_space<vmem>>, vector<16x1xf32>
      %c0_23 = arith.constant 0 : index
      %c0_24 = arith.constant 0 : index
      %48 = vector.load %arg11[%c0_23, %c0_24] : memref<16x1xf32, #tpu.memory_space<vmem>>, vector<16x1xf32>
      %49 = arith.divf %47, %48 : vector<16x1xf32>
      %c0_25 = arith.constant 0 : index
      %c0_26 = arith.constant 0 : index
      %50 = vector.load %arg8[%c0_25, %c0_26] : memref<16x1xf32, #tpu.memory_space<vmem>>, vector<16x1xf32>
      %51 = arith.subf %49, %50 : vector<16x1xf32>
      %c0_27 = arith.constant 0 : index
      %c0_28 = arith.constant 0 : index
      %52 = vector.load %arg9[%c0_27, %c0_28] : memref<16x1xf32, #tpu.memory_space<vmem>>, vector<16x1xf32>
      %cst_29 = arith.constant 9.99999996E-13 : f32
      %53 = vector.broadcast %cst_29 : f32 to vector<16x1xf32>
      %54 = arith.addf %52, %53 : vector<16x1xf32>
      %55 = math.log %54 : vector<16x1xf32>
      %56 = arith.subf %51, %55 : vector<16x1xf32>
      %cst_30 = arith.constant -1.000000e+00 : f32
      %57 = vector.broadcast %cst_30 : f32 to vector<16x1xf32>
      %58 = arith.mulf %57, %56 : vector<16x1xf32>
      %c0_31 = arith.constant 0 : index
      %c0_32 = arith.constant 0 : index
      %59 = vector.load %arg7[%c0_31, %c0_32] : memref<16x1xf32, #tpu.memory_space<vmem>>, vector<16x1xf32>
      tpu.vector_store %arg7[%c0_31, %c0_32], %58 {strides = array<i32>} : memref<16x1xf32, #tpu.memory_space<vmem>>, vector<16x1xf32>,
    } else {
    }
    return
  }
  func.func @transform_0(%arg0: i32, %arg1: i32) -> (i32, i32) {
    %c0_i32 = arith.constant 0 : i32
    %c0_i32_0 = arith.constant 0 : i32
    return %arg0, %c0_i32 : i32, i32
  }
  func.func @transform_1(%arg0: i32, %arg1: i32) -> (i32, i32) {
    %c0_i32 = arith.constant 0 : i32
    %c0_i32_0 = arith.constant 0 : i32
    %c0_i32_1 = arith.constant 0 : i32
    return %c0_i32, %c0_i32_0 : i32, i32
  }
  func.func @transform_2(%arg0: i32, %arg1: i32) -> (i32, i32) {
    %c0_i32 = arith.constant 0 : i32
    %c0_i32_0 = arith.constant 0 : i32
    return %arg0, %c0_i32 : i32, i32
  }
  func.func @transform_3(%arg0: i32, %arg1: i32) -> (i32, i32) {
    %c0_i32 = arith.constant 0 : i32
    %c0_i32_0 = arith.constant 0 : i32
    return %c0_i32, %arg1 : i32, i32
  }
  func.func @transform_4(%arg0: i32, %arg1: i32) -> (i32, i32) {
    %c0_i32 = arith.constant 0 : i32
    %c0_i32_0 = arith.constant 0 : i32
    return %arg0, %c0_i32 : i32, i32
  }
  func.func @transform_5(%arg0: i32, %arg1: i32) -> (i32, i32) {
    %c0_i32 = arith.constant 0 : i32
    %c0_i32_0 = arith.constant 0 : i32
    return %arg0, %c0_i32 : i32, i32
  }
}

</mosaic_0001>

<bundles_post_ra>
// kernel: tpu_custom_call.1
= control target key start
LH: loop header
LB: loop body
LE: loop exit
PB: predicated region body
PF: predicated region fallthrough
CT: control target
= control target key end

     0   :  { %s1906_s0 = inlined_call_operand.vmem [shape: bf16[32,128], index: 0, kind: input, shape index: {}]   ;;  %s1907_s1 = inlined_call_operand.hbm [shape: bf16[256,128], index: 1, kind: input, shape index: {}]   ;;  %s1908_s2 = inlined_call_operand.vmem [shape: s32[32,1], index: 2, kind: input, shape index: {}]   ;;  %s1909_s3 = inlined_call_operand.vmem [shape: s32[1,256], index: 3, kind: input, shape index: {}]   ;;  %s1910_s4 = inlined_call_operand.hbm [shape: f32[32,1000], index: 4, kind: input, shape index: {}]   ;;  %s1911_s5 = inlined_call_operand.vmem [shape: f32[32,1], index: 5, kind: output, shape index: {}]  }
   0x1   :  { %1917 = sst [smem:[#allocation12_spill]] %s1907_s1 }
   0x2   :  { %1918 = sst [smem:[#allocation13_spill]] %s1910_s4 }
   0x3   :  { %10 = vsyncpa [#allocation7], 0 }
   0x4   :  { %11 = vsyncpa [#allocation9], 0 }
   0x5   :  { %13 = vsyncpa [#allocation9 + $0x1], 0  ;;  %s1371_s18 = smov 0   ;;  %s1373_s19 = smov 0  }
   0x6   :  { %s1375_s20 = smov 0   ;;  %s1377_s21 = smov 0  }
   0x7   :  { %s1379_s22 = smov 0   ;;  %s1381_s23 = smov 0  }
   0x8   :  { %s1383_s24 = smov 0   ;;  %s1385_s25 = smov 0  }
   0x9 LB: > { %s972_s26 = sadd.s32 4294967295, %s1326_s25   ;;  %p150_p0 = scmp.ne.s32.totalorder %s1302_s19, %s1298_s18  ;;  %s1326_s25 = sphi %s1385_s25, %s19_s25   ;;  %s1322_s24 = sphi %s1383_s24, %s1938_s24   ;;  %s1318_s23 = sphi %s1381_s23, %s1937_s23   ;;  %s1314_s22 = sphi %s1379_s22, %s1936_s22   ;;  %s1310_s21 = sphi %s1377_s21, %s1935_s21   ;;  %s1306_s20 = sphi %s1375_s20, %s1934_s20   ;;  %s1302_s19 = sphi %s1373_s19, %s1933_s19   ;;  %s1298_s18 = sphi %s1371_s18, %s1932_s18  }
   0xa   : > { %p1411_p1 = scmp.eq.s32.totalorder %s972_s26, 0  ;;  %p974_p2 = scmp.ge.s32.totalorder %s1326_s25, 1 }
   0xb   : > { %p187_p3 = scmp.lt.s32.totalorder %s1326_s25, 5  ;;  %s1328_s30 = smov [#allocation6]  }
   0xc   : > { %s1919_s27 = scalar_select %p1411_p1, 1, 0 }
   0xd   : > { %p1419_p4 = por %p1411_p1, %p150_p0  ;;  %p1423_p5 = pnand %p974_p2, %p187_p3 }
   0xe   : > { %s199_s6 = sshll.u32 %s1328_s30, 4  ;;  %s1923_s1 = sld [smem:[#allocation12_spill]]  ;;  %s200_s6 = int_to_ptr.vmem [resolvable:$true] %s199_s6 }
   0xf   : > { %s1920_s28 = scalar_select %p1419_p4, 1, 0 }
  0x10   : > { %s1921_s29 = scalar_select %p1423_p5, 1, 0 }
  0x11   : > { %p1050_p6 = pneg %p1423_p5 }
  0x13   : > { %p1431_p7 = pnand %p1050_p6, %p1411_p1 }
  0x14   : > { %s1198_s10 = scalar_lea.hbm %s1923_s1, 2048 }
  0x15   : > { %p1199_p8 = scmp.ne.s32.totalorder %s1923_s1, %s1198_s10  ;;  %p1200_p9 = pneg %p1431_p7 }
  0x16   : > { %p1205_p12 = scmp.lt.u32.totalorder %s1198_s10, %s1923_s1 }
  0x17   : > { %p1201_p10 = pnand %p1200_p9, %p1199_p8 }
  0x19   : > { %p1202_p11 = pneg %p1201_p10 }
  0x1b   : > { %p1207_p13 = pnand %p1205_p12, %p1202_p11 }
  0x1d   : > { %1210 = shalt.err (!%p1207_p13)
}
  0x1e   : > { %s1211_s15 = scalar_lea.vmem %s200_s6, 2048  ;;  %p1219_p6 = scmp.lt.s32.totalorder %s200_s6, %s200_s6 }
  0x1f   : > { %p1212_p0 = scmp.ne.s32.totalorder %s200_s6, %s1211_s15  ;;  %p1220_p4 = scmp.lt.s32.totalorder %s1211_s15, %s1211_s15 }
  0x21   : > { %p1214_p2 = pnand %p1212_p0, %p1200_p9  ;;  %p1221_p1 = por %p1220_p4, %p1219_p6 }
  0x23   : > { %p1215_p3 = pneg %p1214_p2 }
  0x25   : > { %p1222_p5 = pnand %p1221_p1, %p1215_p3 }
  0x27   : > { %1225 = shalt.err (!%p1222_p5)
}
  0x28   : > { %s1916_s16 = smov 64   ;;  %s1330_s17 = smov 4  }
  0x29   : > { %1053 = dma.hbm_to_vmem [thread:$0]  (!%p1431_p7), %s1923_s1, 2048, %s200_s6, [#allocation7], %s1916_s16, %s1916_s16, %s1330_s17  }
  0x2a   : > { %s28_s30 = sadd.s32 1, %s1318_s23  ;;  %s31_s8 = sadd.s32 1, %s1322_s24 }
  0x2b   : > { %p29_p1 = scmp.ge.s32.totalorder %s28_s30, 2  ;;  %s137_s9 = sadd.s32 1, %s1306_s20 }
  0x2c   : > { %p144_p4 = scmp.ne.s32.totalorder %s1306_s20, %s1302_s19  ;;  %p145_p5 = scmp.eq.s32.totalorder %s1326_s25, 0 }
  0x2d   : > { %s1940_s30 = smov (%p29_p1, %s28_s30), 0  ;;  %s1942_s8 = smov (!%p29_p1, %s31_s8), %s1322_s24 }
  0x2e   : > { %p1059_p8 = scmp.lt.s32.totalorder %s1326_s25, 4  ;;  %p33_p9 = scmp.ge.s32.totalorder %s1942_s8, 2 }
  0x2f   : > { %s237_s7 = sand.u32 1, %s1306_s20   ;;  %p146_p10 = por %p145_p5, %p144_p4 }
  0x30   : > { %s1944_s8 = smov (%p33_p9, %s1942_s8), 0  ;;  %s977_s10 = sshll.u32 %s237_s7, 7 }
  0x31   : > { %s1010_s6 = sshll.u32 %s1322_s24, 11  ;;  %s134_s11 = ssub.s32 %s1322_s24, %s1944_s8 }
  0x32   : > { %p135_p7 = scmp.eq.s32.totalorder %s134_s11, 0  ;;  %s1924_s4 = sld [smem:[#allocation13_spill]] }
  0x33   : > { %s241_s15 = scalar_lea.vmem [#allocation8], %s977_s10  ;;  %p1474_p11 = pnand %p1059_p8, %p146_p10 }
  0x34   : > { %s249_s17 = sshll.u32 %s241_s15, 4  ;;  %s1483_s11 = scalar_lea.sflag [#allocation9], %s237_s7  ;;  %s1481_s17 = int_to_ptr.vmem [resolvable:$true] %s249_s17 }
  0x35   : > { %s1479_s26 = scalar_select %p135_p7, %s1306_s20, %s137_s9  }
  0x36   : > { %p1228_p13 = pneg %p1474_p11 }
  0x38   : > { %s1472_s14 = scalar_lea.hbm %s1924_s4, %s1010_s6  ;;  %s1231_s13 = scalar_lea.hbm %s1924_s4, 4096 }
  0x39   : > { %s1226_s6 = scalar_lea.hbm %s1472_s14, 2048  ;;  %p1232_p3 = scmp.lt.u32.totalorder %s1472_s14, %s1924_s4 }
  0x3a   : > { %p1227_p12 = scmp.ne.s32.totalorder %s1472_s14, %s1226_s6  ;;  %p1233_p6 = scmp.lt.u32.totalorder %s1231_s13, %s1226_s6 }
  0x3b   : > { %p1235_p4 = scmp.lt.u32.totalorder %s1226_s6, %s1472_s14 }
  0x3c   : > { %p1229_p0 = pnand %p1228_p13, %p1227_p12  ;;  %p1234_p1 = por %p1233_p6, %p1232_p3 }
  0x3e   : > { %p1230_p2 = pneg %p1229_p0  ;;  %p1236_p5 = por %p1235_p4, %p1234_p1 }
  0x40   : > { %p1237_p8 = pnand %p1236_p5, %p1230_p2 }
  0x42   : > { %1240 = shalt.err (!%p1237_p8)
}
  0x43   : > { %s1241_s9 = scalar_lea.vmem %s1481_s17, 2048  ;;  %s1331_s7 = smov [#allocation8]  }
  0x44   : > { %p1242_p9 = scmp.ne.s32.totalorder %s1481_s17, %s1241_s9  ;;  %s1246_s10 = sshll.u32 %s1331_s7, 4  ;;  %s1247_s10 = int_to_ptr.vmem [resolvable:$false] %s1246_s10 }
  0x45   : > { %s1248_s16 = scalar_lea.vmem %s1247_s10, 4096  ;;  %p1249_p12 = scmp.lt.s32.totalorder %s1481_s17, %s1247_s10 }
  0x46   : > { %p1244_p10 = pnand %p1242_p9, %p1228_p13  ;;  %p1250_p0 = scmp.lt.s32.totalorder %s1248_s16, %s1241_s9 }
  0x48   : > { %p1245_p7 = pneg %p1244_p10  ;;  %p1251_p3 = por %p1250_p0, %p1249_p12 }
  0x4a   : > { %p1252_p6 = pnand %p1251_p3, %p1245_p7 }
  0x4c   : > { %1255 = shalt.err (!%p1252_p6)
}
  0x4d   : > { %s1332_s6 = smov 1024   ;;  %s1926_s12 = smov 64  }
  0x4e   : > { %1057 = dma.hbm_to_vmem [thread:$0]  (!%p1474_p11), %s1472_s14, 2048, %s1481_s17, %s1483_s11, %s1332_s6, %s1332_s6, %s1926_s12  }
  0x4f   : > { %p1927_p13 = scmp.ne.s32.totalorder %s1921_s29, 0 }
  0x50   : > { %p1928_p2 = scmp.ne.s32.totalorder (!%p1927_p13), %s1919_s27, 0 }
  0x51   : > { %261 = sbr.rel (%p1927_p13) target bundleno = 1329 (0x531), region = 40 }
  0x58   : > { %1289 = dma.done.wait (%p1928_p2), [#allocation7], 2048  }
  0x59   : > { %1291 = vsyncadd (%p1928_p2), [#allocation7], 4294965248  ;;  %s267_s13 = sand.u32 1, %s1302_s19   ;;  %p1929_p1 = scmp.ne.s32.totalorder %s1920_s28, 0 }
  0x5a   : > { %s983_s15 = sshll.u32 %s267_s13, 7  ;;  %s268_s9 = scalar_lea.sflag [#allocation9], %s267_s13 }
  0x5b   : > { %s1519_s18 = scalar_lea.vmem [#allocation8], %s983_s15 }
  0x5c   : > { %1293 = dma.done.wait (%p1929_p1), %s268_s9, 2048  }
  0x5d   : > { %1295 = vsyncadd (%p1929_p1), %s268_s9, 4294965248  ;;  %s984_s29 = sshll.u32 %s1314_s22, 1  ;;  %p323_p11 = scmp.lt.s32.totalorder %s1310_s21, 1 }
  0x5e   : > { %p312_p4 = scmp.lt.s32.totalorder %s984_s29, 3  ;;  %p990_p5 = scmp.ne.s32.totalorder %s1310_s21, 0 }
  0x5f   : > { %s1528_s27 = scalar_select %p323_p11, %s1310_s21, 1 }
  0x60   : > { %s1946_s29 = smov (!%p312_p4, %s984_s29), 3  ;;  %339 = sbr.rel (%p990_p5) target bundleno = 430 (0x1ae), region = 52 }
  0x61   : > { %s325_s11 = scalar_lea.vmem %s1909_s3, %s1528_s27  ;;  %s985_s7 = sshll.u32 %s1946_s29, 2  ;;  %v1553_v2 = vld [vmem:[%s1519_s18] sm:$0xff] (!%p990_p5)  ;;  %v1556_v3 = vld [vmem:[%s1519_s18 + $0x8] sm:$0xff] (!%p990_p5)  ;;  %v1559_v4 = vld [vmem:[%s1519_s18 + $0x10] sm:$0xff] (!%p990_p5)  ;;  %vm408_vm0 = vcmask (!%p990_p5), 850944   ;;  %v1333_v9 = vmov (!%p990_p5), 0   ;;  %v356_v36 = vlaneseq (!%p990_p5) }
  0x62   : > { %s987_s10 = sshll.u32 %s1946_s29, 3  ;;  %s1537_s28 = scalar_lea.vmem %s1906_s0, %s985_s7  ;;  %v1562_v5 = vld [vmem:[%s1519_s18 + $0x18] sm:$0xff] (!%p990_p5)  ;;  %v1565_v6 = vld [vmem:[%s1519_s18 + $0x20] sm:$0xff] (!%p990_p5)  ;;  %v1568_v7 = vld [vmem:[%s1519_s18 + $0x28] sm:$0xff] (!%p990_p5)  ;;  %v403_v8 = vmax.f32 (!%p990_p5), %v1553_v2, %v1559_v4  ;;  %1137 = vset.pattern.permute.xlu1 (!%p990_p5), %v1333_v9  ;;  %1138 = vset.pattern.permute.xlu0 (!%p990_p5), %v1333_v9  ;;  %vm424_vm1 = vcmask (!%p990_p5), 7168   ;;  %v1334_v35 = vmov (!%p990_p5), 1.0  }
  0x63   : > { %s321_s15 = scalar_lea.vmem %s1908_s2, %s987_s10  ;;  %s1545_s4 = scalar_lea.vmem %s1911_s5, %s987_s10  ;;  %v1573_v10 = vld [vmem:[%s1519_s18 + $0x30] sm:$0xff] (!%p990_p5)  ;;  %v1576_v11 = vld [vmem:[%s1519_s18 + $0x38] sm:$0xff] (!%p990_p5)  ;;  %v404_v12 = vmax.f32 (!%p990_p5), %v1556_v3, %v1562_v5  ;;  %v1581_v13 = vld [vmem:[%s1519_s18 + $0x40] sm:$0xff] (!%p990_p5)  ;;  %535 = vst.msk [vmem:[#allocation5] sm:$0xff] (!%p990_p5), %vm424_vm1, %v1334_v35  ;;  %v357_v37 = vand.u32 (!%p990_p5), 127, %v356_v36 }
  0x64   : > { %v1547_v0 = vld [vmem:[%s321_s15] sm:$0xff]  ;;  %v1549_v1 = vld [vmem:[%s321_s15 + $0x8] sm:$0xff]  ;;  %v405_v14 = vmax.f32 (!%p990_p5), %v403_v8, %v1565_v6  ;;  %v409_v15 = vsel (!%p990_p5), %vm408_vm0, %v1576_v11, -inf  ;;  %v1591_v17 = vld [vmem:[%s1519_s18 + $0x50] sm:$0xff] (!%p990_p5)  ;;  %536 = vst.msk [vmem:[#allocation5 + $0x8] sm:$0xff] (!%p990_p5), %vm424_vm1, %v1334_v35 }
  0x65   : > { %366 = vperm.xlu1 (!%p990_p5), %1137, %v1547_v0   ;;  %v1588_v16 = vld [vmem:[%s1519_s18 + $0x48] sm:$0xff] (!%p990_p5)  ;;  %v1594_v18 = vld [vmem:[%s1519_s18 + $0x58] sm:$0xff] (!%p990_p5)  ;;  %v406_v19 = vmax.f32 (!%p990_p5), %v404_v12, %v1568_v7  ;;  %v1598_v20 = vld [vmem:[%s1519_s18 + $0x60] sm:$0xff] (!%p990_p5)  ;;  %v414_v22 = vmax.f32 (!%p990_p5), %v1581_v13, %v1591_v17  ;;  %v358_v39 = vadd.s32 (!%p990_p5), 128, %v357_v37  ;;  %v1624_v40 = vadd.s32 (!%p990_p5), 256, %v357_v37 }
  0x66   : > { %v1601_v21 = vld [vmem:[%s1519_s18 + $0x68] sm:$0xff] (!%p990_p5)  ;;  %v415_v23 = vmax.f32 (!%p990_p5), %v1588_v16, %v1594_v18  ;;  %v407_v24 = vmax.f32 (!%p990_p5), %v405_v14, %v1573_v10  ;;  %v1609_v25 = vld [vmem:[%s1519_s18 + $0x70] sm:$0xff] (!%p990_p5)  ;;  %v1612_v26 = vld [vmem:[%s1519_s18 + $0x78] sm:$0xff] (!%p990_p5)  ;;  %v1626_v41 = vadd.s32 (!%p990_p5), 384, %v357_v37  ;;  %v1629_v42 = vadd.s32 (!%p990_p5), 512, %v357_v37 }
  0x67   : > { %v410_v27 = vmax.f32 %v406_v19, %v409_v15  ;;  %v416_v28 = vmax.f32 %v414_v22, %v1598_v20  ;;  %v419_v30 = vsel %vm408_vm0, %v1612_v26, -inf  ;;  %v1335_v43 = vmov 0.0001001001  }
  0x68   : > { %v417_v29 = vmax.f32 %v415_v23, %v1601_v21  ;;  %v1639_v46 = vadd.s32 640, %v357_v37  ;;  %v1641_v47 = vadd.s32 768, %v357_v37  ;;  %v1643_v48 = vadd.s32 896, %v357_v37 }
  0x69   : > { %369 = vperm.xlu1 %1137, %v1549_v1   ;;  %v411_v31 = vmax.f32 %v407_v24, %v410_v27  ;;  %v418_v32 = vmax.f32 %v416_v28, %v1609_v25 }
  0x6a   : > { %v420_v33 = vmax.f32 %v417_v29, %v419_v30 }
  0x6b   : > { %412 = vmax.xlane.f32.xlu0 %v411_v31 }
  0x6c   : > { %v421_v34 = vmax.f32 %v418_v32, %v420_v33 }
  0x6f   : > { %422 = vmax.xlane.f32.xlu0 %v421_v34 }
  0xe4   : > { %v1622_v38 = vpop.permute.xlu1 %366 }
  0xe5   : > { %vm371_vm2 = vcmp.eq.s32.totalorder %v357_v37, %v1622_v38  ;;  %vm372_vm3 = vcmp.eq.s32.totalorder %v358_v39, %v1622_v38  ;;  %vm373_vm4 = vcmp.eq.s32.totalorder %v1624_v40, %v1622_v38  ;;  %vm374_vm5 = vcmp.eq.s32.totalorder %v1626_v41, %v1622_v38 }
  0xe6   : > { %v387_v44 = vsel %vm371_vm2, 0.9, %v1335_v43  ;;  %vm375_vm6 = vcmp.eq.s32.totalorder %v1629_v42, %v1622_v38  ;;  %v388_v50 = vsel %vm372_vm3, 0.9, %v1335_v43  ;;  %v389_v51 = vsel %vm373_vm4, 0.9, %v1335_v43 }
  0xe7   : > { %v390_v52 = vsel %vm374_vm5, 0.9, %v1335_v43  ;;  %v497_v53 = vmul.f32 %v387_v44, %v1553_v2  ;;  %vm376_vm9 = vcmp.eq.s32.totalorder %v1639_v46, %v1622_v38  ;;  %v498_v12 = vmul.f32 %v388_v50, %v1556_v3 }
  0xe8   : > { %v1637_v45 = vpop.permute.xlu1 %369  ;;  %v499_v14 = vmul.f32 %v389_v51, %v1559_v4  ;;  %vm377_vm11 = vcmp.eq.s32.totalorder %v1641_v47, %v1622_v38  ;;  %v391_v36 = vsel %vm375_vm6, 0.9, %v1335_v43  ;;  %v392_v50 = vsel %vm376_vm9, 0.9, %v1335_v43 }
  0xe9   : > { %vm379_vm7 = vcmp.eq.s32.totalorder %v357_v37, %v1637_v45  ;;  %vm380_vm8 = vcmp.eq.s32.totalorder %v358_v39, %v1637_v45  ;;  %vm381_vm10 = vcmp.eq.s32.totalorder %v1624_v40, %v1637_v45  ;;  %v513_v29 = vadd.f32 %v498_v12, %v497_v53 }
  0xea   : > { %v395_v22 = vsel %vm379_vm7, 0.9, %v1335_v43  ;;  %v397_v35 = vsel %vm381_vm10, 0.9, %v1335_v43  ;;  %vm382_vm12 = vcmp.eq.s32.totalorder %v1626_v41, %v1637_v45  ;;  %vm383_vm13 = vcmp.eq.s32.totalorder %v1629_v42, %v1637_v45 }
  0xeb   : > { %v505_v32 = vmul.f32 %v395_v22, %v1581_v13  ;;  %v514_v40 = vadd.f32 %v513_v29, %v499_v14  ;;  %v507_v44 = vmul.f32 %v397_v35, %v1591_v17  ;;  %vm384_vm14 = vcmp.eq.s32.totalorder %v1639_v46, %v1637_v45 }
  0xec   : > { %vm378_vm15 = vcmp.eq.s32.totalorder %v1643_v48, %v1622_v38  ;;  %vm385_vm2 = vcmp.eq.s32.totalorder %v1641_v47, %v1637_v45  ;;  %v400_v14 = vsel %vm384_vm14, 0.9, %v1335_v43  ;;  %vm386_vm3 = vcmp.eq.s32.totalorder %v1643_v48, %v1637_v45 }
  0xed   : > { %v510_v29 = vmul.f32 %v400_v14, %v1601_v21 }
  0xf8   : > { %v413_v49 = vpop.xlane.xlu0 %412 }
  0xf9   : > { %v427_v54 = vsub.f32 %v1553_v2, %v413_v49  ;;  %v428_v55 = vsub.f32 %v1556_v3, %v413_v49  ;;  %v429_v56 = vsub.f32 %v1559_v4, %v413_v49  ;;  %v430_v57 = vsub.f32 %v1562_v5, %v413_v49  ;;  %425 = vst.msk [vmem:[#allocation2] sm:$0xff] %vm424_vm1, %v413_v49 }
  0xfa   : > { %v431_v58 = vsub.f32 %v1565_v6, %v413_v49  ;;  %v432_v59 = vsub.f32 %v1568_v7, %v413_v49  ;;  %v433_v60 = vsub.f32 %v1573_v10, %v413_v49  ;;  %v434_v8 = vsub.f32 %v1576_v11, %v413_v49 }
  0xfb   : > { %v443_v61 = vmul.f32 1.442695, %v427_v54  ;;  %v445_v62 = vmul.f32 1.442695, %v428_v55  ;;  %v447_v63 = vmul.f32 1.442695, %v429_v56 }
  0xfc   : > { %v1663_v2 = vpop.xlane.xlu0 %422  ;;  %v449_v9 = vmul.f32 1.442695, %v430_v57  ;;  %v451_v19 = vmul.f32 1.442695, %v431_v58  ;;  %v453_v24 = vmul.f32 1.442695, %v432_v59 }
  0xfd   : > { %v435_v15 = vsub.f32 %v1581_v13, %v1663_v2  ;;  %1139 = vpow2.f32 %v443_v61  ;;  %426 = vst.msk [vmem:[#allocation2 + $0x8] sm:$0xff] %vm424_vm1, %v1663_v2  ;;  %v436_v23 = vsub.f32 %v1588_v16, %v1663_v2  ;;  %v396_v3 = vsel %vm380_vm8, 0.9, %v1335_v43 }
  0xfe   : > { %1141 = vpow2.f32 %v445_v62  ;;  %v455_v4 = vmul.f32 1.442695, %v433_v60  ;;  %v437_v27 = vsub.f32 %v1591_v17, %v1663_v2  ;;  %v457_v28 = vmul.f32 1.442695, %v434_v8 }
  0xff   : > { %1143 = vpow2.f32 %v447_v63  ;;  %v438_v30 = vsub.f32 %v1594_v18, %v1663_v2  ;;  %v459_v31 = vmul.f32 1.442695, %v435_v15  ;;  %v506_v33 = vmul.f32 %v396_v3, %v1588_v16 }
 0x100   : > { %1145 = vpow2.f32 %v449_v9  ;;  %v461_v34 = vmul.f32 1.442695, %v436_v23  ;;  %v463_v37 = vmul.f32 1.442695, %v437_v27  ;;  %v500_v13 = vmul.f32 %v390_v52, %v1562_v5 }
 0x101   : > { %1147 = vpow2.f32 %v451_v19  ;;  %v439_v16 = vsub.f32 %v1598_v20, %v1663_v2  ;;  %v465_v39 = vmul.f32 1.442695, %v438_v30  ;;  %v523_v49 = vadd.f32 %v506_v33, %v505_v32 }
 0x102   : > { %1149 = vpow2.f32 %v453_v24  ;;  %v440_v41 = vsub.f32 %v1601_v21, %v1663_v2  ;;  %v398_v5 = vsel %vm382_vm12, 0.9, %v1335_v43  ;;  %v501_v52 = vmul.f32 %v391_v36, %v1565_v6 }
 0x103   : > { %1151 = vpow2.f32 %v455_v4  ;;  %v442_v53 = vsub.f32 %v1612_v26, %v1663_v2  ;;  %v441_v54 = vsub.f32 %v1609_v25, %v1663_v2  ;;  %v467_v55 = vmul.f32 1.442695, %v439_v16 }
 0x104   : > { %1153 = vpow2.f32 %v457_v28  ;;  %v515_v58 = vadd.f32 %v514_v40, %v500_v13  ;;  %v508_v6 = vmul.f32 %v398_v5, %v1594_v18  ;;  %v524_v59 = vadd.f32 %v523_v49, %v507_v44 }
 0x105   : > { %1155 = vpow2.f32 %v459_v31  ;;  %v469_v42 = vmul.f32 1.442695, %v440_v41  ;;  %v399_v61 = vsel %vm383_vm13, 0.9, %v1335_v43  ;;  %v393_v2 = vsel %vm377_vm11, 0.9, %v1335_v43 }
 0x106   : > { %1157 = vpow2.f32 %v461_v34  ;;  %v502_v8 = vmul.f32 %v392_v50, %v1568_v7  ;;  %v473_v9 = vmul.f32 1.442695, %v442_v53  ;;  %v471_v18 = vmul.f32 1.442695, %v441_v54 }
 0x107   : > { %v1140_v51 = vpop.eup %1139  ;;  %1159 = vpow2.f32 %v463_v37  ;;  %v516_v22 = vadd.f32 %v515_v58, %v501_v52  ;;  %v509_v23 = vmul.f32 %v399_v61, %v1598_v20  ;;  %v525_v24 = vadd.f32 %v524_v59, %v508_v6 }
 0x108   : > { %v1142_v17 = vpop.eup %1141  ;;  %1161 = vpow2.f32 %v465_v39  ;;  %v394_v27 = vsel %vm378_vm15, 0.9, %v1335_v43  ;;  %v503_v28 = vmul.f32 %v393_v2, %v1573_v10  ;;  %v401_v20 = vsel %vm385_vm2, 0.9, %v1335_v43 }
 0x109   : > { %v1144_v56 = vpop.eup %1143  ;;  %v475_v57 = vadd.f32 %v1142_v17, %v1140_v51  ;;  %1163 = vpow2.f32 %v467_v55  ;;  %v517_v32 = vadd.f32 %v516_v22, %v502_v8  ;;  %v526_v33 = vadd.f32 %v525_v24, %v509_v23 }
 0x10a   : > { %v1146_v60 = vpop.eup %1145  ;;  %1165 = vpow2.f32 %v469_v42  ;;  %v504_v10 = vmul.f32 %v394_v27, %v1576_v11  ;;  %v402_v37 = vsel %vm386_vm3, 0.9, %v1335_v43  ;;  %v511_v13 = vmul.f32 %v401_v20, %v1609_v25 }
 0x10b   : > { %v1148_v62 = vpop.eup %1147  ;;  %v476_v63 = vadd.f32 %v1144_v56, %v475_v57  ;;  %1167 = vpow2.f32 %v473_v9  ;;  %v518_v47 = vadd.f32 %v517_v32, %v503_v28  ;;  %v527_v21 = vadd.f32 %v526_v33, %v510_v29 }
 0x10c   : > { %v1150_v12 = vpop.eup %1149  ;;  %1169 = vpow2.f32 %v471_v18  ;;  %v519_v40 = vsel %vm408_vm0, %v504_v10, 0.0  ;;  %v512_v44 = vmul.f32 %v402_v37, %v1612_v26 }
 0x10d   : > { %v1152_v15 = vpop.eup %1151  ;;  %v477_v19 = vadd.f32 %v1146_v60, %v476_v63  ;;  %v520_v41 = vadd.f32 %v519_v40, %v518_v47  ;;  %v528_v43 = vadd.f32 %v527_v21, %v511_v13 }
 0x10e   : > { %v1154_v3 = vpop.eup %1153  ;;  %v529_v52 = vsel %vm408_vm0, %v512_v44, 0.0 }
 0x10f   : > { %v1156_v7 = vpop.eup %1155  ;;  %v478_v4 = vadd.f32 %v1148_v62, %v477_v19  ;;  %v481_v48 = vsel %vm408_vm0, %v1154_v3, 0.0  ;;  %v530_v54 = vadd.f32 %v529_v52, %v528_v43 }
 0x110   : > { %v1158_v46 = vpop.eup %1157 }
 0x111   : > { %v1160_v30 = vpop.eup %1159  ;;  %v479_v31 = vadd.f32 %v1150_v12, %v478_v4  ;;  %v485_v38 = vadd.f32 %v1158_v46, %v1156_v7 }
 0x112   : > { %v1162_v34 = vpop.eup %1161 }
 0x113   : > { %v480_v35 = vadd.f32 %v1152_v15, %v479_v31  ;;  %v486_v36 = vadd.f32 %v1160_v30, %v485_v38  ;;  %v1164_v39 = vpop.eup %1163 }
 0x114   : > { %v1166_v11 = vpop.eup %1165 }
 0x115   : > { %v482_v45 = vadd.f32 %v481_v48, %v480_v35  ;;  %v487_v16 = vadd.f32 %v1162_v34, %v486_v36  ;;  %v1168_v50 = vpop.eup %1167 }
 0x116   : > { %v1170_v51 = vpop.eup %1169  ;;  %v491_v53 = vsel %vm408_vm0, %v1168_v50, 0.0 }
 0x117   : > { %483 = vadd.xlane.f32.xlu0 %v482_v45  ;;  %v488_v49 = vadd.f32 %v1164_v39, %v487_v16 }
 0x119   : > { %v489_v5 = vadd.f32 %v1166_v11, %v488_v49 }
 0x11b   : > { %521 = vadd.xlane.f32.xlu0 %v520_v41  ;;  %v490_v25 = vadd.f32 %v1170_v51, %v489_v5 }
 0x11d   : > { %v492_v17 = vadd.f32 %v491_v53, %v490_v25 }
 0x11f   : > { %493 = vadd.xlane.f32.xlu1 %v492_v17  ;;  %531 = vadd.xlane.f32.xlu0 %v530_v54 }
 0x1a4   : > { %v484_v55 = vpop.xlane.xlu0 %483 }
 0x1a5   : > { %495 = vst.msk [vmem:[#allocation3] sm:$0xff] %vm424_vm1, %v484_v55 }
 0x1a8   : > { %v522_v26 = vpop.xlane.xlu0 %521 }
 0x1a9   : > { %533 = vst.msk [vmem:[#allocation4] sm:$0xff] %vm424_vm1, %v522_v26 }
 0x1ac   : > { %v494_v56 = vpop.xlane.xlu1 %493  ;;  %v532_v57 = vpop.xlane.xlu0 %531 }
 0x1ad   : > { %496 = vst.msk [vmem:[#allocation3 + $0x8] sm:$0xff] %vm424_vm1, %v494_v56  ;;  %534 = vst.msk [vmem:[#allocation4 + $0x8] sm:$0xff] %vm424_vm1, %v532_v57 }
 0x1ae PF: > { %s991_s1 = sshll.u32 %s1310_s21, 7  ;;  %v701_v58 = vlaneseq  ;;  %s1757_s18 = sshll.u32 %s1314_s22, 4  ;;  %v1336_v6 = vmov 0.0   ;;  %vm1337_vm0 = vmmov 0   ;;  %v1181_v14 = vld [vmem:[%s1537_s28] sm:$0xff]   ;;  %v1338_v24 = vmov 0  }
 0x1af   : > { %1024 = vmatprep.subr.bf16.mxu0 %v1336_v6  ;;  %s538_s29 = sshra.s32 %s991_s1, 3  ;;  %v703_v59 = vstv %s991_s1  ;;  %s1012_s14 = sadd.s32 128, %s991_s1  ;;  %1040 = vmatprep.mubr.msk.bf16.mxu0 %vm1337_vm0, %v1336_v6  ;;  %v655_v3 = vld [vmem:[#allocation2] sm:$0xff]  ;;  %vm685_vm4 = vcmask 7168   ;;  %v656_v27 = vld [vmem:[#allocation2 + $0x8] sm:$0xff] }
 0x1b0   : > { %s992_s17 = sshll.u32 %s538_s29, 2  ;;  %v702_v60 = vand.u32 127, %v701_v58  ;;  %p1761_p8 = scmp.lt.s32.totalorder %s1757_s18, %s1012_s14  ;;  %1171 = vset.pattern.permute.xlu1 %v1338_v24  ;;  %1172 = vset.pattern.permute.xlu0 %v1338_v24 }
 0x1b1   : > { %s1014_s10 = sadd.s32 16, %s1757_s18  ;;  %s541_s22 = scalar_lea.vmem [#allocation6], %s992_s17 }
 0x1b2   : > { %v1173_v42 = vld [vmem:[%s541_s22] sm:$0xff]   ;;  %v1766_v61 = vadd.s32 %v703_v59, %v702_v60  ;;  %p1768_p9 = scmp.lt.s32.totalorder %s991_s1, %s1014_s10  ;;  %v1174_v62 = vld [vmem:[%s541_s22 + $0x8] sm:$0xff]   ;;  %v1175_v63 = vld [vmem:[%s541_s22 + $0x10] sm:$0xff]  }
 0x1b3   : > { %1025 = vmatpush3.bf16.xpose.msra.mxu0 %v1173_v42  ;;  %v1176_v2 = vld [vmem:[%s541_s22 + $0x18] sm:$0xff]   ;;  %v1177_v8 = vld [vmem:[%s541_s22 + $0x20] sm:$0xff]   ;;  %v1178_v9 = vld [vmem:[%s541_s22 + $0x28] sm:$0xff]  }
 0x1b4   : > { %vm705_vm1 = vcmp.lt.s32.totalorder %v1766_v61, 240  ;;  %p713_p10 = pnand %p1768_p9, %p1761_p8  ;;  %1026 = vmatprep.subr.bf16.mxu0 %v1336_v6  ;;  %v1179_v12 = vld [vmem:[%s541_s22 + $0x30] sm:$0xff]   ;;  %v1180_v18 = vld [vmem:[%s541_s22 + $0x38] sm:$0xff]  }
 0x1b5   : > { %v718_v47 = vshrl.u32 (!%p713_p10), %v701_v58, 7  ;;  %v720_v16 = vstv (!%p713_p10), %s1757_s18  ;;  %v1339_v44 = vmov (!%p713_p10), 0.0   ;;  %v757_v51 = vld [vmem:[#allocation5] sm:$0xff] (!%p713_p10)  ;;  %v743_v25 = vld [vmem:[#allocation4] sm:$0xff] (!%p713_p10)  ;;  %v730_v26 = vld [vmem:[#allocation3 + $0x8] sm:$0xff] (!%p713_p10) }
 0x1b6   : > { %v729_v55 = vld [vmem:[#allocation3] sm:$0xff] (!%p713_p10)  ;;  %v758_v58 = vld [vmem:[#allocation5 + $0x8] sm:$0xff] (!%p713_p10)  ;;  %v744_v59 = vld [vmem:[#allocation4 + $0x8] sm:$0xff] (!%p713_p10) }
 0x1b7   : > { %v721_v21 = vadd.s32 (!%p713_p10), %v720_v16, %v718_v47  ;;  %v719_v39 = vadd.s32 (!%p713_p10), 8, %v718_v47 }
 0x1b9   : > { %vm723_vm7 = vcmp.ne.s32.totalorder (!%p713_p10), %v721_v21, %v1766_v61  ;;  %v722_v40 = vadd.s32 (!%p713_p10), %v720_v16, %v719_v39 }
 0x1ba   : > { %vm725_vm11 = vmand (!%p713_p10), %vm723_vm7, %vm705_vm1 }
 0x1bb   : > { %1027 = vmatpush3.bf16.xpose.msra.mxu0 %v1174_v62  ;;  %vm724_vm9 = vcmp.ne.s32.totalorder (!%p713_p10), %v722_v40, %v1766_v61 }
 0x1bc   : > { %1028 = vmatprep.subr.bf16.mxu0 %v1336_v6  ;;  %vm726_vm12 = vmand (!%p713_p10), %vm724_vm9, %vm705_vm1 }
 0x1c3   : > { %1029 = vmatpush3.bf16.xpose.msra.mxu0 %v1175_v63 }
 0x1c4   : > { %1030 = vmatprep.subr.bf16.mxu0 %v1336_v6 }
 0x1cb   : > { %1031 = vmatpush3.bf16.xpose.msra.mxu0 %v1176_v2 }
 0x1cc   : > { %1032 = vmatprep.subr.bf16.mxu0 %v1336_v6 }
 0x1d3   : > { %1033 = vmatpush3.bf16.xpose.msra.mxu0 %v1177_v8 }
 0x1d4   : > { %1034 = vmatprep.subr.bf16.mxu0 %v1336_v6 }
 0x1db   : > { %1035 = vmatpush3.bf16.xpose.msra.mxu0 %v1178_v9 }
 0x1dc   : > { %1036 = vmatprep.subr.bf16.mxu0 %v1336_v6 }
 0x1e3   : > { %1037 = vmatpush3.bf16.xpose.msra.mxu0 %v1179_v12 }
 0x1e4   : > { %1038 = vmatprep.subr.bf16.mxu0 %v1336_v6 }
 0x1eb   : > { %1039 = vmatpush3.bf16.xpose.msra.mxu0 %v1180_v18 }
 0x1f2   : > { %1041 = vmatmul.mubr.bf16.vlgmr.msra.gmra.mrb[0].mxu0 %v1181_v14 }
 0x2c5   : > { %v1778_v15 = vpop.f32.mrb[0].mxu0 }
 0x2c6   : > { %657 = vmax.xlane.f32.xlu0 %v1778_v15  ;;  %v1042_v19 = vpop.f32.mrb[1].mxu0 }
 0x2c7   : > { %v1781_v22 = vpop.f32.mrb[2].mxu0 }
 0x2c8   : > { %v1043_v23 = vpop.f32.mrb[3].mxu0 }
 0x2ca   : > { %659 = vmax.xlane.f32.xlu0 %v1781_v22 }
 0x2e0   : > { %690 = vperm.xlu0 %1172, %v1547_v0   ;;  %v1792_v0 = vld [vmem:[%s325_s11] ss:$0 sm:$0xff] }
 0x353   : > { %v658_v7 = vpop.xlane.xlu0 %657 }
 0x354   : > { %v661_v4 = vmax.f32 %v655_v3, %v658_v7 }
 0x356   : > { %v663_v28 = vsub.f32 %v655_v3, %v661_v4  ;;  %686 = vst.msk [vmem:[#allocation2] sm:$0xff] %vm685_vm4, %v661_v4  ;;  %671 = vperm.xlu1 %1171, %v661_v4  }
 0x357   : > { %v660_v46 = vpop.xlane.xlu0 %659 }
 0x358   : > { %v665_v20 = vmul.f32 1.442695, %v663_v28  ;;  %v662_v29 = vmax.f32 %v656_v27, %v660_v46 }
 0x35a   : > { %1182 = vpow2.f32 %v665_v20  ;;  %v664_v30 = vsub.f32 %v656_v27, %v662_v29  ;;  %687 = vst.msk [vmem:[#allocation2 + $0x8] sm:$0xff] %vm685_vm4, %v662_v29  ;;  %676 = vperm.xlu1 %1171, %v662_v29  }
 0x35c   : > { %v667_v31 = vmul.f32 1.442695, %v664_v30 }
 0x35e   : > { %1184 = vpow2.f32 %v667_v31  ;;  %693 = vperm.xlu1 %1171, %v1549_v1  }
 0x35f   : > { %v1795_v32 = vpop.permute.xlu0 %690 }
 0x360   : > { %vm699_vm5 = vcmp.eq.s32.totalorder %v1795_v32, %v1792_v0 }
 0x361   : > { %vm727_vm8 = vmand (!%p713_p10), %vm699_vm5, %vm723_vm7 }
 0x362   : > { %v759_v49 = vsel (!%p713_p10), %vm727_vm8, 1.0, %v1339_v44  ;;  %v745_v11 = vsel (!%p713_p10), %vm727_vm8, %v1778_v15, 0.0 }
 0x363   : > { %747 = vadd.xlane.f32.xlu0 (!%p713_p10), %v745_v11 }
 0x364   : > { %v1799_v38 = vpop.eup %1182 }
 0x365   : > { %v731_v63 = vmul.f32 (!%p713_p10), %v1799_v38, %v729_v55 }
 0x368   : > { %v1801_v33 = vpop.eup %1184 }
 0x369   : > { %v732_v2 = vmul.f32 (!%p713_p10), %v1801_v33, %v730_v26 }
 0x382   : > { %761 = vadd.xlane.f32.xlu1 (!%p713_p10), %v759_v49 }
 0x3d5   : > { %v672_v34 = vpop.permute.xlu1 %671 }
 0x3d6   : > { %v679_v10 = vsub.f32 %v1778_v15, %v672_v34 }
 0x3d8   : > { %v681_v35 = vmul.f32 1.442695, %v679_v10 }
 0x3d9   : > { %v677_v36 = vpop.permute.xlu1 %676 }
 0x3da   : > { %1186 = vpow2.f32 %v681_v35  ;;  %v680_v37 = vsub.f32 %v1781_v22, %v677_v36 }
 0x3dc   : > { %v683_v48 = vmul.f32 1.442695, %v680_v37 }
 0x3dd   : > { %v1805_v13 = vpop.permute.xlu1 %693 }
 0x3de   : > { %1188 = vpow2.f32 %v683_v48  ;;  %vm700_vm6 = vcmp.eq.s32.totalorder %v1805_v13, %v1792_v0 }
 0x3df   : > { %vm728_vm10 = vmand (!%p713_p10), %vm700_vm6, %vm724_vm9 }
 0x3e0   : > { %v760_v50 = vsel (!%p713_p10), %vm728_vm10, 1.0, %v1339_v44  ;;  %v746_v41 = vsel (!%p713_p10), %vm728_vm10, %v1781_v22, 0.0 }
 0x3e1   : > { %763 = vadd.xlane.f32.xlu1 (!%p713_p10), %v760_v50  ;;  %749 = vadd.xlane.f32.xlu0 (!%p713_p10), %v746_v41 }
 0x3e2   : > { %716 = sbr.rel (%p713_p10) target bundleno = 1147 (0x47b), region = 56 }
 0x3e4   : > { %v1809_v1 = vpop.eup %1186 }
 0x3e5   : > { %v733_v5 = vsel (!%p713_p10), %vm725_vm11, %v1809_v1, 0.0 }
 0x3e6   : > { %735 = vadd.xlane.f32.xlu0 (!%p713_p10), %v733_v5 }
 0x3e8   : > { %v1811_v45 = vpop.eup %1188 }
 0x3e9   : > { %v734_v43 = vsel %vm726_vm12, %v1811_v45, 0.0 }
 0x3ea   : > { %737 = vadd.xlane.f32.xlu1 %v734_v43 }
 0x3f0   : > { %v748_v53 = vpop.xlane.xlu0 %747 }
 0x3f1   : > { %v751_v54 = vmul.f32 0.05, %v748_v53 }
 0x3f3   : > { %v753_v57 = vadd.f32 %v751_v54, %v743_v25 }
 0x3f5   : > { %755 = vst.msk [vmem:[#allocation4] sm:$0xff] %vm685_vm4, %v753_v57 }
 0x40f   : > { %v762_v52 = vpop.xlane.xlu1 %761 }
 0x410   : > { %v765_v17 = vmul.f32 0.05, %v762_v52 }
 0x412   : > { %v767_v56 = vadd.f32 %v765_v17, %v757_v51 }
 0x414   : > { %769 = vst.msk [vmem:[#allocation5] sm:$0xff] %vm685_vm4, %v767_v56 }
 0x46e   : > { %v764_v6 = vpop.xlane.xlu1 %763  ;;  %v750_v60 = vpop.xlane.xlu0 %749 }
 0x46f   : > { %v766_v42 = vmul.f32 0.05, %v764_v6  ;;  %v752_v62 = vmul.f32 0.05, %v750_v60 }
 0x471   : > { %v768_v8 = vadd.f32 %v766_v42, %v758_v58  ;;  %v754_v9 = vadd.f32 %v752_v62, %v744_v59 }
 0x473   : > { %v736_v12 = vpop.xlane.xlu0 %735  ;;  %770 = vst.msk [vmem:[#allocation5 + $0x8] sm:$0xff] %vm685_vm4, %v768_v8  ;;  %756 = vst.msk [vmem:[#allocation4 + $0x8] sm:$0xff] %vm685_vm4, %v754_v9 }
 0x474   : > { %v739_v14 = vadd.f32 %v736_v12, %v731_v63 }
 0x476   : > { %741 = vst.msk [vmem:[#allocation3] sm:$0xff] %vm685_vm4, %v739_v14 }
 0x477   : > { %v738_v18 = vpop.xlane.xlu1 %737 }
 0x478   : > { %v740_v19 = vadd.f32 %v738_v18, %v732_v2 }
 0x47a   : > { %742 = vst.msk [vmem:[#allocation3 + $0x8] sm:$0xff] %vm685_vm4, %v740_v19 }
 0x47b PF: > { %773 = sbr.rel (!%p713_p10) target bundleno = 1302 (0x516), region = 60  ;;  %v790_v23 = vsel (%p713_p10), %vm699_vm5, %v1778_v15, 0.0  ;;  %v1340_v24 = vmov (%p713_p10), 0.0   ;;  %v791_v7 = vsel (%p713_p10), %vm700_vm6, %v1781_v22, 0.0  ;;  %v774_v15 = vsel (%p713_p10), %vm705_vm1, %v1809_v1, 0.0  ;;  %v788_v46 = vld [vmem:[#allocation4] sm:$0xff] (%p713_p10) }
 0x47c   : > { %v804_v3 = vsel (%p713_p10), %vm699_vm5, 1.0, %v1340_v24  ;;  %792 = vadd.xlane.f32.xlu0 (%p713_p10), %v790_v23  ;;  %v805_v4 = vsel (%p713_p10), %vm700_vm6, 1.0, %v1340_v24  ;;  %v775_v27 = vsel (%p713_p10), %vm705_vm1, %v1811_v45, 0.0  ;;  %v802_v22 = vld [vmem:[#allocation5] sm:$0xff] (%p713_p10)  ;;  %v789_v35 = vld [vmem:[#allocation4 + $0x8] sm:$0xff] (%p713_p10)  ;;  %v803_v37 = vld [vmem:[#allocation5 + $0x8] sm:$0xff] (%p713_p10) }
 0x47d   : > { %806 = vadd.xlane.f32.xlu1 (%p713_p10), %v804_v3  ;;  %v780_v31 = vld [vmem:[#allocation3] sm:$0xff] (%p713_p10) }
 0x47e   : > { %v782_v48 = vmul.f32 (%p713_p10), %v1799_v38, %v780_v31 }
 0x480   : > { %794 = vadd.xlane.f32.xlu0 (%p713_p10), %v791_v7 }
 0x481   : > { %808 = vadd.xlane.f32.xlu1 (%p713_p10), %v805_v4  ;;  %v781_v32 = vld [vmem:[#allocation3 + $0x8] sm:$0xff] (%p713_p10) }
 0x482   : > { %v783_v1 = vmul.f32 %v1801_v33, %v781_v32 }
 0x484   : > { %776 = vadd.xlane.f32.xlu0 %v774_v15 }
 0x485   : > { %778 = vadd.xlane.f32.xlu1 %v775_v27 }
 0x509   : > { %v793_v28 = vpop.xlane.xlu0 %792 }
 0x50a   : > { %v807_v20 = vpop.xlane.xlu1 %806  ;;  %v796_v29 = vmul.f32 0.05, %v793_v28 }
 0x50b   : > { %v810_v30 = vmul.f32 0.05, %v807_v20 }
 0x50c   : > { %v798_v0 = vadd.f32 %v796_v29, %v788_v46 }
 0x50d   : > { %v812_v34 = vadd.f32 %v810_v30, %v802_v22  ;;  %v795_v10 = vpop.xlane.xlu0 %794 }
 0x50e   : > { %800 = vst.msk [vmem:[#allocation4] sm:$0xff] %vm685_vm4, %v798_v0  ;;  %v809_v36 = vpop.xlane.xlu1 %808  ;;  %v797_v61 = vmul.f32 0.05, %v795_v10 }
 0x50f   : > { %814 = vst.msk [vmem:[#allocation5] sm:$0xff] %vm685_vm4, %v812_v34  ;;  %v811_v13 = vmul.f32 0.05, %v809_v36 }
 0x510   : > { %v799_v45 = vadd.f32 %v797_v61, %v789_v35 }
 0x511   : > { %v813_v47 = vadd.f32 %v811_v13, %v803_v37  ;;  %v777_v16 = vpop.xlane.xlu0 %776 }
 0x512   : > { %801 = vst.msk [vmem:[#allocation4 + $0x8] sm:$0xff] %vm685_vm4, %v799_v45  ;;  %v779_v21 = vpop.xlane.xlu1 %778  ;;  %v784_v39 = vadd.f32 %v782_v48, %v777_v16 }
 0x513   : > { %815 = vst.msk [vmem:[#allocation5 + $0x8] sm:$0xff] %vm685_vm4, %v813_v47  ;;  %v785_v40 = vadd.f32 %v783_v1, %v779_v21 }
 0x514   : > { %786 = vst.msk [vmem:[#allocation3] sm:$0xff] %vm685_vm4, %v784_v39 }
 0x515   : > { %787 = vst.msk [vmem:[#allocation3 + $0x8] sm:$0xff] %vm685_vm4, %v785_v40 }
 0x516 PF: > { %p1006_p7 = scmp.ne.s32.totalorder %s1310_s21, 1 }
 0x517   : > { %v822_v38 = vld [vmem:[#allocation5] sm:$0xff] (!%p1006_p7)  ;;  %v820_v41 = vld [vmem:[#allocation4] sm:$0xff] (!%p1006_p7)  ;;  %v829_v53 = vld [vmem:[#allocation2 + $0x8] sm:$0xff] (!%p1006_p7) }
 0x518   : > { %819 = sbr.rel (%p1006_p7) target bundleno = 1329 (0x531), region = 64  ;;  %1190 = vrcp.f32 (!%p1006_p7), %v822_v38  ;;  %v828_v51 = vld [vmem:[#allocation2] sm:$0xff] (!%p1006_p7) }
 0x519   : > { %v821_v5 = vld [vmem:[#allocation4 + $0x8] sm:$0xff] (!%p1006_p7) }
 0x51a   : > { %v823_v44 = vld [vmem:[#allocation5 + $0x8] sm:$0xff] (!%p1006_p7) }
 0x51b   : > { %v832_v33 = vld [vmem:[#allocation3] sm:$0xff] (!%p1006_p7)  ;;  %1192 = vrcp.f32 (!%p1006_p7), %v823_v44 }
 0x51c   : > { %v834_v49 = vadd.f32 (!%p1006_p7), 1e-12, %v832_v33  ;;  %v833_v11 = vld [vmem:[#allocation3 + $0x8] sm:$0xff] (!%p1006_p7) }
 0x51d   : > { %v835_v50 = vadd.f32 (!%p1006_p7), 1e-12, %v833_v11 }
 0x51e   : > { %1194 = vlog2.f32 (!%p1006_p7), %v834_v49 }
 0x51f   : > { %1196 = vlog2.f32 %v835_v50 }
 0x522   : > { %v1191_v43 = vpop.eup %1190 }
 0x523   : > { %v825_v25 = vmul.f32 %v1191_v43, %v820_v41 }
 0x525   : > { %v1193_v52 = vpop.eup %1192  ;;  %v830_v55 = vsub.f32 %v825_v25, %v828_v51 }
 0x526   : > { %v827_v17 = vmul.f32 %v1193_v52, %v821_v5 }
 0x528   : > { %v1195_v54 = vpop.eup %1194  ;;  %v831_v57 = vsub.f32 %v827_v17, %v829_v53 }
 0x529   : > { %v1197_v26 = vpop.eup %1196  ;;  %v837_v56 = vmul.f32 0.6931472, %v1195_v54 }
 0x52a   : > { %v839_v58 = vmul.f32 0.6931472, %v1197_v26 }
 0x52b   : > { %v840_v6 = vsub.f32 %v830_v55, %v837_v56 }
 0x52c   : > { %v841_v59 = vsub.f32 %v831_v57, %v839_v58 }
 0x52d   : > { %v842_v60 = vmul.f32 -1.0, %v840_v6 }
 0x52e   : > { %v843_v42 = vmul.f32 -1.0, %v841_v59 }
 0x52f   : > { %844 = vst.msk [vmem:[%s1545_s4] sm:$0xff] %vm685_vm4, %v842_v60 }
 0x530   : > { %845 = vst.msk [vmem:[%s1545_s4 + $0x8] sm:$0xff] %vm685_vm4, %v843_v42 }
 0x531 PF: > { %s19_s25 = sadd.s32 1, %s1326_s25   ;;  %s1932_s18 = smov %s1302_s19 }
 0x532   : > { %p16_p12 = scmp.ge.s32.totalorder %s19_s25, 6   ;;  %s1933_s19 = smov %s1306_s20 }
 0x533   : > { %s1934_s20 = smov %s1479_s26  ;;  %s1935_s21 = smov %s1318_s23 }
 0x534   : > { %s1936_s22 = smov %s1322_s24  ;;  %s1937_s23 = smov %s1940_s30 }
 0x535   : > { %s1938_s24 = smov %s1944_s8  ;;  %18 = sbr.rel (!%p16_p12) target bundleno = 9 (0x9), region = 111 }
 0x53c   :  { %868 = vsyncpa [#allocation7], 1 }
 0x53d   :  { %870 = vsyncpa [#allocation7 + $0x1], 1 }
 0x53e   :  { %871 = vsyncpa [#allocation9], 1 }
 0x53f   :  { %873 = vsyncpa [#allocation9 + $0x1], 1 }

</bundles_post_ra>
